<compile_context>
chip_gen: v7x
topology: tpu7x:2x2x1
jax: 0.10.0
libtpu: 0.0.40
codegen_flags: <defaults>
</compile_context>

<pallas_src>
import functools

import jax
import jax.numpy as jnp
from jax import lax
from jax.experimental import pallas as pl
from jax.experimental.pallas import tpu as pltpu


def _rup(x, m):
    return (x + m - 1) // m * m


# ------------------------- generation-aware sizing ---------------------------

@functools.lru_cache(maxsize=1)
def _vmem_capacity_bytes():
    cap = 128 * 1024 * 1024
    try:
        cap = int(getattr(pltpu.get_tpu_info(), "vmem_capacity_bytes", cap))
    except Exception:
        pass
    return cap


def _vmem_limit_bytes():
    # v7x (64 MiB physical) -> 48 MiB; v5e/v6e (128 MiB) -> 96 MiB.
    return int(min(_vmem_capacity_bytes() * 3 // 4, 96 * 1024 * 1024))


def _tm_cap():
    # Bigger row tiles where VMEM allows (v5e/v6e); cap at 512 on v7x.
    return 1024 if _vmem_capacity_bytes() >= 128 * 1024 * 1024 else 512


# ------------------------------ Pallas kernels ------------------------------

def _matmul_kernel(*refs, relu, mode):
    """Tiled matmul + bias epilogue.

    Grid: (M//tm, N//tn, K//tk); K is the reduction ('arbitrary') axis.
    mode:
      "plain"    : refs = x, w, bias, out, acc
      "residual" : refs = x, w, bias, res, out, acc       (out += res)
      "down"     : refs = x, w, bias, xd, wd, out, acc    (out += xd @ wd)
    """
    if mode == "down":
        x_ref, w_ref, b_ref, xd_ref, wd_ref, o_ref, acc_ref = refs
    elif mode == "residual":
        x_ref, w_ref, b_ref, r_ref, o_ref, acc_ref = refs
    else:
        x_ref, w_ref, b_ref, o_ref, acc_ref = refs

    k = pl.program_id(2)

    @pl.when(k == 0)
    def _():
        acc_ref[...] = jnp.zeros_like(acc_ref)

    acc_ref[...] += jnp.dot(x_ref[...], w_ref[...],
                            preferred_element_type=jnp.float32)

    @pl.when(k == pl.num_programs(2) - 1)
    def _():
        out = acc_ref[...] + b_ref[...]
        if mode == "down":
            # Fused downsample 1x1 conv (BN already folded into wd).
            out = out + jnp.dot(xd_ref[...], wd_ref[...],
                                preferred_element_type=jnp.float32)
        elif mode == "residual":
            out = out + r_ref[...].astype(jnp.float32)
        if relu:
            out = jnp.maximum(out, 0.0)
        o_ref[...] = out.astype(o_ref.dtype)


def _conv3x3_kernel(x_ref, w_ref, b_ref, o_ref, *, taps, row_chunk):
    """3x3 conv (any stride, pad=1) + BN bias + ReLU for one row-chunk.

    Grid: (image, row chunk, Cout tile).
    x_ref : (1, s*s, L, C) bf16 — per-image spatial phases, flat rows, pitch Wc.
    w_ref : (9, C, tn) bf16 — BN-scale-folded taps.
    b_ref : (1, tn) f32.
    o_ref : (1, row_chunk, tn) bf16.
    Per chunk all 9 tap dots are summed in vregs (no VMEM accumulator RMW),
    then bias + ReLU + one store.
    """
    base = pl.multiple_of(pl.program_id(1) * row_chunk, row_chunk)
    acc = None
    for t, (phase, start) in enumerate(taps):
        slab = x_ref[0, phase, pl.ds(base + start, row_chunk), :]   # (rc, C)
        y = jnp.dot(slab, w_ref[t], preferred_element_type=jnp.float32)
        acc = y if acc is None else acc + y
    out = jnp.maximum(acc + b_ref[...], 0.0)
    o_ref[0, :, :] = out.astype(o_ref.dtype)


# ------------------------------ kernel wrappers ------------------------------

def fused_matmul(x, w, bias, *, relu, out_dtype, residual=None, down=None):
    """relu?( x @ w + bias [+ residual | + xd @ wd] ) with a pipelined grid."""
    M, K = x.shape
    Nc = w.shape[1]

    tm_cap = _tm_cap()
    if M >= tm_cap:
        tm = tm_cap
        Mp = _rup(M, tm)
    else:
        Mp = _rup(M, 16)          # bf16 sublane packing
        tm = Mp
    if Mp != M:
        pad = Mp - M
        x = jnp.pad(x, ((0, pad), (0, 0)))
        if residual is not None:
            residual = jnp.pad(residual, ((0, pad), (0, 0)))
        if down is not None:
            xd, wd = down
            down = (jnp.pad(xd, ((0, pad), (0, 0))), wd)

    tn = 512 if Nc % 512 == 0 else (256 if Nc % 256 == 0 else 128)
    tk = 512 if K % 512 == 0 else (256 if K % 256 == 0 else 128)
    grid = (Mp // tm, Nc // tn, K // tk)

    in_specs = [pl.BlockSpec((tm, tk), lambda i, j, k: (i, k)),
                pl.BlockSpec((tk, tn), lambda i, j, k: (k, j)),
                pl.BlockSpec((1, tn), lambda i, j, k: (0, j))]
    args = [x, w, bias]
    flops = 2 * Mp * Nc * K
    bytes_acc = (x.size * 2 + w.size * 2 + bias.size * 4
                 + Mp * Nc * jnp.dtype(out_dtype).itemsize)

    if down is not None:
        mode = "down"
        xd, wd = down
        Kd = xd.shape[1]
        # Block index constant along j/k -> DMA'd once per row tile, no concat.
        in_specs += [pl.BlockSpec((tm, Kd), lambda i, j, k: (i, 0)),
                     pl.BlockSpec((Kd, tn), lambda i, j, k: (0, j))]
        args += [xd, wd]
        flops += 2 * Mp * Nc * Kd
        bytes_acc += xd.size * 2 + wd.size * 2
    elif residual is not None:
        mode = "residual"
        in_specs.append(pl.BlockSpec((tm, tn), lambda i, j, k: (i, j)))
        args.append(residual)
        bytes_acc += residual.size * residual.dtype.itemsize
    else:
        mode = "plain"

    kern = functools.partial(_matmul_kernel, relu=relu, mode=mode)
    out = pl.pallas_call(
        kern,
        out_shape=jax.ShapeDtypeStruct((Mp, Nc), out_dtype),
        grid=grid,
        in_specs=in_specs,
        out_specs=pl.BlockSpec((tm, tn), lambda i, j, k: (i, j)),
        scratch_shapes=[pltpu.VMEM((tm, tn), jnp.float32)],
        compiler_params=pltpu.CompilerParams(
            dimension_semantics=("parallel", "parallel", "arbitrary"),
            vmem_limit_bytes=_vmem_limit_bytes()),
        cost_estimate=pl.CostEstimate(flops=int(flops), transcendentals=0,
                                      bytes_accessed=int(bytes_acc)),
    )(*args)
    return out[:M] if Mp != M else out


def conv3x3_bn_relu(phases, w2, bias, taps, Mp, row_chunk):
    """3x3 conv + folded-BN + ReLU.  Grid: (image, row chunk, Cout tile)."""
    N, nphase, L, C = phases.shape
    Co = w2.shape[-1]
    tn = 128
    kern = functools.partial(_conv3x3_kernel, taps=taps, row_chunk=row_chunk)
    flops = 2 * N * Mp * C * Co * len(taps)
    bytes_acc = int(phases.size * 2 + w2.size * 2 + N * Mp * Co * 2)
    return pl.pallas_call(
        kern,
        out_shape=jax.ShapeDtypeStruct((N, Mp, Co), jnp.bfloat16),
        grid=(N, Mp // row_chunk, Co // tn),
        in_specs=[pl.BlockSpec((1, nphase, L, C), lambda n, m, j: (n, 0, 0, 0)),
                  pl.BlockSpec((len(taps), C, tn), lambda n, m, j: (0, 0, j)),
                  pl.BlockSpec((1, tn), lambda n, m, j: (0, j))],
        out_specs=pl.BlockSpec((1, row_chunk, tn), lambda n, m, j: (n, m, j)),
        compiler_params=pltpu.CompilerParams(
            dimension_semantics=("parallel", "parallel", "parallel"),
            vmem_limit_bytes=_vmem_limit_bytes()),
        cost_estimate=pl.CostEstimate(flops=flops, transcendentals=0,
                                      bytes_accessed=bytes_acc),
    )(phases, w2, bias)


# ------------------------------ JAX glue -------------------------------------

def _fold_bn(gamma, beta, mean, var, eps=1e-5):
    scale = gamma / jnp.sqrt(var + eps)
    bias = beta - mean * scale
    return scale, bias


def _prep_w1x1(w, scale, kpad, npad):
    """(Cout, Cin, 1, 1) conv weight -> BN-scale-folded (Cin_p, Cout_p) bf16."""
    cout, cin = w.shape[0], w.shape[1]
    wf = (w[:, :, 0, 0] * scale[:, None]).T                     # (Cin, Cout)
    wf = jnp.pad(wf, ((0, kpad - cin), (0, npad - cout)))
    return wf.astype(jnp.bfloat16)


def _prep_w3x3(w, scale, kpad, npad):
    """(Cout, Cin, 3, 3) -> (9, Cin_p, Cout_p) bf16, taps ordered kh*3+kw."""
    cout, cin = w.shape[0], w.shape[1]
    wf = jnp.transpose(w, (2, 3, 1, 0)).reshape(9, cin, cout) * scale[None, None, :]
    wf = jnp.pad(wf, ((0, 0), (0, kpad - cin), (0, npad - cout)))
    return wf.astype(jnp.bfloat16)


def _pad_bias(b, npad):
    return jnp.pad(b, (0, npad - b.shape[0])).reshape(1, npad).astype(jnp.float32)


def _make_phases(x_nhwc, stride, max_row_chunk=256):
    """pad=1, split into stride^2 spatial phases, flatten spatial rows.

    Row pitch Wc is padded to a multiple of 8 (sublane alignment for the
    ih-tap offsets).  Output rows use pitch Wc; columns >= Wo and rows >=
    Ho*Wc are garbage and cropped by the caller.
    Returns (phases bf16 (N, s*s, L, C), Ho, Wo, Wc, Mp, taps, row_chunk) with
    taps = ((phase, start_row_offset), ...) in kh*3+kw order.
    """
    N, H, W, C = x_nhwc.shape
    s = stride
    Ho = (H - 1) // s + 1
    Wo = (W - 1) // s + 1
    xp = jnp.pad(x_nhwc, ((0, 0), (1, 1), (1, 1), (0, 0)))
    Hp, Wp = H + 2, W + 2
    Hc = -(-Hp // s)
    Wc = _rup(-(-Wp // s), 8)
    xp = jnp.pad(xp, ((0, 0), (0, Hc * s - Hp), (0, Wc * s - Wp), (0, 0)))
    ph = xp.reshape(N, Hc, s, Wc, s, C).transpose(0, 2, 4, 1, 3, 5)
    ph = ph.reshape(N, s * s, Hc * Wc, C)

    taps = tuple(((kh % s) * s + (kw % s), (kh // s) * Wc + (kw // s))
                 for kh in range(3) for kw in range(3))
    M = Ho * Wc                               # multiple of 8 (Wc is)
    row_chunk = min(max_row_chunk, M)
    Mp = _rup(M, row_chunk)
    max_start = max(st for _, st in taps)
    L_need = Mp + max_start
    if L_need > Hc * Wc:
        ph = jnp.pad(ph, ((0, 0), (0, 0), (0, L_need - Hc * Wc), (0, 0)))
    return ph, Ho, Wo, Wc, Mp, taps, row_chunk


def bottleneck_forward(x_nchw, params, stride):
    x = jnp.transpose(x_nchw, (0, 2, 3, 1))                      # NHWC
    N, H, W, Cin = x.shape
    w1 = params["conv1_w"]
    planes = w1.shape[0]
    Cout = 4 * planes
    Cin_p, Cpl_p, Cout_p = _rup(Cin, 128), _rup(planes, 128), _rup(Cout, 128)

    # bf16 BEFORE channel padding (halves the pad-pass bytes).
    x_bf = x.astype(jnp.bfloat16)
    x_p = x_bf if Cin_p == Cin else jnp.pad(
        x_bf, ((0, 0), (0, 0), (0, 0), (0, Cin_p - Cin)))

    # ---- conv1 (1x1) + bn1 + relu ----------------------------------------
    s1, b1 = _fold_bn(*params["bn1"])
    w1m = _prep_w1x1(w1, s1, Cin_p, Cpl_p)
    b1v = _pad_bias(b1, Cpl_p)
    out1 = fused_matmul(x_p.reshape(N * H * W, Cin_p), w1m, b1v,
                        relu=True, out_dtype=jnp.bfloat16)
    out1 = out1.reshape(N, H, W, Cpl_p)

    # ---- conv2 (3x3, stride) + bn2 + relu --------------------------------
    s2, b2 = _fold_bn(*params["bn2"])
    w2m = _prep_w3x3(params["conv2_w"], s2, Cpl_p, Cpl_p)
    b2v = _pad_bias(b2, Cpl_p)
    phases, Ho, Wo, Wc, Mp_rows, taps, row_chunk = _make_phases(out1, stride)
    out2 = conv3x3_bn_relu(phases, w2m, b2v, taps, Mp_rows, row_chunk)
    out2_2d = out2.reshape(N * Mp_rows, Cpl_p)

    # ---- conv3 (1x1) + bn3, fused with downsample / identity + relu ------
    s3, b3 = _fold_bn(*params["bn3"])
    w3m = _prep_w1x1(params["conv3_w"], s3, Cpl_p, Cout_p)
    b3v = _pad_bias(b3, Cout_p)

    if stride != 1 or Cin != Cout:
        sd, bd = _fold_bn(*params["down_bn"])
        wdm = _prep_w1x1(params["down_w"], sd, Cin_p, Cout_p)
        bdv = _pad_bias(bd, Cout_p)
        xd = x_bf[:, ::stride, ::stride, :]                      # (N, Ho, Wo, Cin)
        xd = jnp.pad(xd, ((0, 0), (0, 0), (0, Wc - Wo), (0, Cin_p - Cin)))
        xd = xd.reshape(N, Ho * Wc, Cin_p)
        if Mp_rows != Ho * Wc:
            xd = jnp.pad(xd, ((0, 0), (0, Mp_rows - Ho * Wc), (0, 0)))
        out3 = fused_matmul(out2_2d, w3m, b3v + bdv, relu=True,
                            out_dtype=jnp.bfloat16,
                            down=(xd.reshape(N * Mp_rows, Cin_p), wdm))
    else:
        # Identity shortcut (PyTorch: downsample = empty Sequential).
        resid = jnp.pad(x_bf, ((0, 0), (0, 0), (0, Wc - W), (0, Cout_p - Cin)))
        resid = resid.reshape(N, H * Wc, Cout_p)
        if Mp_rows != H * Wc:
            resid = jnp.pad(resid, ((0, 0), (0, Mp_rows - H * Wc), (0, 0)))
        out3 = fused_matmul(out2_2d, w3m, b3v, relu=True,
                            out_dtype=jnp.bfloat16,
                            residual=resid.reshape(N * Mp_rows, Cout_p))

    out3 = out3.reshape(N, Mp_rows, Cout_p)[:, :Ho * Wc, :]
    out3 = out3.reshape(N, Ho, Wc, Cout_p)[:, :, :Wo, :Cout]
    return jnp.transpose(out3, (0, 3, 1, 2)).astype(jnp.float32)  # NCHW f32


# ------------------------------ pure-JAX reference ---------------------------

def _conv2d_nchw(x, w, stride=1, padding=0):
    return lax.conv_general_dilated(
        x, w, (stride, stride), [(padding, padding)] * 2,
        dimension_numbers=("NCHW", "OIHW", "NCHW"))


def _bn_nchw(x, gamma, beta, mean, var, eps=1e-5):
    scale = gamma / jnp.sqrt(var + eps)
    bias = beta - mean * scale
    return x * scale[None, :, None, None] + bias[None, :, None, None]


def bottleneck_reference(x, p, stride):
    out = jax.nn.relu(_bn_nchw(_conv2d_nchw(x, p["conv1_w"]), *p["bn1"]))
    out = jax.nn.relu(_bn_nchw(_conv2d_nchw(out, p["conv2_w"], stride, 1), *p["bn2"]))
    out = _bn_nchw(_conv2d_nchw(out, p["conv3_w"]), *p["bn3"])
    cin, cout = x.shape[1], p["conv3_w"].shape[0]
    if stride != 1 or cin != cout:
        res = _bn_nchw(_conv2d_nchw(x, p["down_w"], stride), *p["down_bn"])
    else:
        res = x                                  # PyTorch: empty downsample
    return jax.nn.relu(out + res)


# ------------------------------ main ------------------------------------------

def _make_params(key, in_planes, planes):
    exp = 4
    ks = jax.random.split(key, 16)

    def nrm(k, shape, scale=0.1):
        return scale * jax.random.normal(k, shape, jnp.float32)

    def bn_params(k, c):
        k1, k2, k3, k4 = jax.random.split(k, 4)
        gamma = 1.0 + 0.1 * jax.random.normal(k1, (c,), jnp.float32)
        beta = 0.1 * jax.random.normal(k2, (c,), jnp.float32)
        mean = 0.1 * jax.random.normal(k3, (c,), jnp.float32)
        var = 1.0 + 0.1 * jnp.abs(jax.random.normal(k4, (c,), jnp.float32))
        return (gamma, beta, mean, var)

    return {
        "conv1_w": nrm(ks[0], (planes, in_planes, 1, 1)),
        "bn1": bn_params(ks[1], planes),
        "conv2_w": nrm(ks[2], (planes, planes, 3, 3)),
        "bn2": bn_params(ks[3], planes),
        "conv3_w": nrm(ks[4], (exp * planes, planes, 1, 1)),
        "bn3": bn_params(ks[5], exp * planes),
        "down_w": nrm(ks[6], (exp * planes, in_planes, 1, 1)),
        "down_bn": bn_params(ks[7], exp * planes),
    }


def _check(out, ref):
    err = float(jnp.max(jnp.abs(out - ref)))
    tol = 2e-2 + 2e-2 * float(jnp.max(jnp.abs(ref)))   # bf16 MXU path
    assert err < tol, (err, tol)


if __name__ == "__main__":
    key = jax.random.PRNGKey(0)
    kx1, kp1, kx2, kp2 = jax.random.split(key, 4)

    # Case 1: stride=2 with active downsample (fused second-dot path).
    N, in_planes, planes, stride, H = 2, 16, 8, 2, 8
    x1 = jax.random.normal(kx1, (N, in_planes, H, H), jnp.float32)
    p1 = _make_params(kp1, in_planes, planes)
    out1 = jax.block_until_ready(bottleneck_forward(x1, p1, stride))
    ref1 = jax.block_until_ready(bottleneck_reference(x1, p1, stride))
    assert out1.shape == (N, 4 * planes, H // stride, H // stride), out1.shape
    _check(out1, ref1)

    # Case 2: stride=1, in_planes == 4*planes -> identity shortcut path.
    in_planes2, planes2, stride2 = 32, 8, 1
    x2 = jax.random.normal(kx2, (N, in_planes2, H, H), jnp.float32)
    p2 = _make_params(kp2, in_planes2, planes2)
    out2 = jax.block_until_ready(bottleneck_forward(x2, p2, stride2))
    ref2 = jax.block_until_ready(bottleneck_reference(x2, p2, stride2))
    assert out2.shape == (N, 4 * planes2, H, H), out2.shape
    _check(out2, ref2)

    print("KERNEL_OK")
</pallas_src>

<mosaic_0001>
module attributes {stable_mosaic.version = 11 : i64} {
  func.func @_matmul_kernel(%arg0: i32, %arg1: i32, %arg2: i32, %arg3: memref<128x128xbf16, #tpu.memory_space<vmem>>, %arg4: memref<128x128xbf16, #tpu.memory_space<vmem>>, %arg5: memref<1x128xf32, #tpu.memory_space<vmem>>, %arg6: memref<128x128xbf16, #tpu.memory_space<vmem>>, %arg7: memref<128x128xf32, #tpu.memory_space<vmem>>) attributes {dimension_semantics = [#tpu.dimension_semantics<parallel>, #tpu.dimension_semantics<parallel>, #tpu.dimension_semantics<arbitrary>], iteration_bounds = array<i64: 1, 1, 1>, scalar_prefetch = 0 : i64, scratch_operands = 1 : i64, tpu.core_type = #tpu.core_type<tc>, window_params = [{transform_indices = @transform_0, window_bounds = array<i64: 128, 128>}, {transform_indices = @transform_1, window_bounds = array<i64: 128, 128>}, {transform_indices = @transform_2, window_bounds = array<i64: 1, 128>}, {transform_indices = @transform_3, window_bounds = array<i64: 128, 128>}]} {
    %c0_i32 = arith.constant 0 : i32
    %0 = arith.cmpi eq, %arg2, %c0_i32 : i32
    %1 = arith.extui %0 : i1 to i32
    %c0_i32_0 = arith.constant 0 : i32
    %2 = arith.cmpi ne, %1, %c0_i32_0 : i32
    scf.if %2 {
      %cst_10 = arith.constant 0.000000e+00 : f32
      %12 = vector.broadcast %cst_10 : f32 to vector<128x128xf32>
      %c0_11 = arith.constant 0 : index
      %c0_12 = arith.constant 0 : index
      %13 = vector.load %arg7[%c0_11, %c0_12] : memref<128x128xf32, #tpu.memory_space<vmem>>, vector<128x128xf32>
      tpu.vector_store %arg7[%c0_11, %c0_12], %12 {strides = array<i32>} : memref<128x128xf32, #tpu.memory_space<vmem>>, vector<128x128xf32>,
    } else {
    }
    %c0 = arith.constant 0 : index
    %c0_1 = arith.constant 0 : index
    %3 = vector.load %arg7[%c0, %c0_1] : memref<128x128xf32, #tpu.memory_space<vmem>>, vector<128x128xf32>
    %c0_2 = arith.constant 0 : index
    %c0_3 = arith.constant 0 : index
    %4 = vector.load %arg3[%c0_2, %c0_3] : memref<128x128xbf16, #tpu.memory_space<vmem>>, vector<128x128xbf16>
    %c0_4 = arith.constant 0 : index
    %c0_5 = arith.constant 0 : index
    %5 = vector.load %arg4[%c0_4, %c0_5] : memref<128x128xbf16, #tpu.memory_space<vmem>>, vector<128x128xbf16>
    %cst = arith.constant dense<0.000000e+00> : vector<128x128xf32>
    %6 = tpu.matmul %4, %5, %cst {dimension_numbers = #tpu.dot_dimension_numbers<[1], [0], [0], [1], [0, 0, 1, 1], [], []>} : vector<128x128xbf16>, vector<128x128xbf16>, vector<128x128xf32> -> vector<128x128xf32>
    %7 = arith.addf %3, %6 : vector<128x128xf32>
    %c0_6 = arith.constant 0 : index
    %c0_7 = arith.constant 0 : index
    %8 = vector.load %arg7[%c0_6, %c0_7] : memref<128x128xf32, #tpu.memory_space<vmem>>, vector<128x128xf32>
    tpu.vector_store %arg7[%c0_6, %c0_7], %7 {strides = array<i32>} : memref<128x128xf32, #tpu.memory_space<vmem>>, vector<128x128xf32>,
    %c0_i32_8 = arith.constant 0 : i32
    %9 = arith.cmpi eq, %arg2, %c0_i32_8 : i32
    %10 = arith.extui %9 : i1 to i32
    %c0_i32_9 = arith.constant 0 : i32
    %11 = arith.cmpi ne, %10, %c0_i32_9 : i32
    scf.if %11 {
      %c0_10 = arith.constant 0 : index
      %c0_11 = arith.constant 0 : index
      %12 = vector.load %arg7[%c0_10, %c0_11] : memref<128x128xf32, #tpu.memory_space<vmem>>, vector<128x128xf32>
      %c0_12 = arith.constant 0 : index
      %c0_13 = arith.constant 0 : index
      %13 = vector.load %arg5[%c0_12, %c0_13] : memref<1x128xf32, #tpu.memory_space<vmem>>, vector<1x128xf32>
      %14 = vector.broadcast %13 : vector<1x128xf32> to vector<128x128xf32>
      %15 = arith.addf %12, %14 : vector<128x128xf32>
      %cst_14 = arith.constant 0.000000e+00 : f32
      %16 = vector.broadcast %cst_14 : f32 to vector<128x128xf32>
      %17 = arith.maximumf %15, %16 : vector<128x128xf32>
      %18 = arith.truncf %17 : vector<128x128xf32> to vector<128x128xbf16>
      %c0_15 = arith.constant 0 : index
      %c0_16 = arith.constant 0 : index
      %19 = vector.load %arg6[%c0_15, %c0_16] : memref<128x128xbf16, #tpu.memory_space<vmem>>, vector<128x128xbf16>
      tpu.vector_store %arg6[%c0_15, %c0_16], %18 {strides = array<i32>} : memref<128x128xbf16, #tpu.memory_space<vmem>>, vector<128x128xbf16>,
    } else {
    }
    return
  }
  func.func @transform_0(%arg0: i32, %arg1: i32, %arg2: i32) -> (i32, i32) {
    %c0_i32 = arith.constant 0 : i32
    return %arg0, %arg2 : i32, i32
  }
  func.func @transform_1(%arg0: i32, %arg1: i32, %arg2: i32) -> (i32, i32) {
    %c0_i32 = arith.constant 0 : i32
    return %arg2, %arg1 : i32, i32
  }
  func.func @transform_2(%arg0: i32, %arg1: i32, %arg2: i32) -> (i32, i32) {
    %c0_i32 = arith.constant 0 : i32
    %c0_i32_0 = arith.constant 0 : i32
    return %c0_i32, %arg1 : i32, i32
  }
  func.func @transform_3(%arg0: i32, %arg1: i32, %arg2: i32) -> (i32, i32) {
    %c0_i32 = arith.constant 0 : i32
    return %arg0, %arg1 : i32, i32
  }
}

</mosaic_0001>

<bundles_post_ra>
// kernel: tpu_custom_call.1
= control target key start
LH: loop header
LB: loop body
LE: loop exit
PB: predicated region body
PF: predicated region fallthrough
CT: control target
= control target key end

     0   :  { %8 = vsyncpa [#allocation4], 0  ;;  %s870_s0 = inlined_call_operand.hbm [shape: bf16[128,128], index: 0, kind: input, shape index: {}]   ;;  %s871_s1 = inlined_call_operand.hbm [shape: bf16[128,128], index: 1, kind: input, shape index: {}]   ;;  %s872_s2 = inlined_call_operand.hbm [shape: f32[1,128], index: 2, kind: input, shape index: {}]   ;;  %s873_s3 = inlined_call_operand.hbm [shape: bf16[128,128], index: 3, kind: output, shape index: {}]  }
   0x1   :  { %9 = vsyncpa [#allocation7], 0 }
   0x2   :  { %10 = vsyncpa [#allocation5], 0  ;;  %s780_s12 = smov [#allocation6]   ;;  %s781_s14 = smov [#allocation3]  }
   0x3   :  { %s28_s13 = sshll.u32 %s780_s12, 4  ;;  %s16_s15 = sshll.u32 %s781_s14, 4  ;;  %s29_s13 = int_to_ptr.vmem [resolvable:$true] %s28_s13  ;;  %s806_s15 = int_to_ptr.vmem [resolvable:$true] %s16_s15 }
   0x4   :  { %s686_s18 = scalar_lea.hbm %s871_s1, 1024 }
   0x5   :  { %p687_p0 = scmp.ne.s32.totalorder %s871_s1, %s686_s18  ;;  %p690_p1 = scmp.lt.u32.totalorder %s686_s18, %s871_s1 }
   0x7   :  { %p692_p2 = pnand %p690_p1, %p687_p0 }
   0x9   :  { %695 = shalt.err (!%p692_p2)
}
   0xa   :  { %s696_s23 = scalar_lea.vmem %s29_s13, 1024  ;;  %p701_p4 = scmp.lt.s32.totalorder %s29_s13, %s29_s13 }
   0xb   :  { %p697_p3 = scmp.ne.s32.totalorder %s29_s13, %s696_s23  ;;  %p702_p5 = scmp.lt.s32.totalorder %s696_s23, %s696_s23 }
   0xd   :  { %p703_p6 = por %p702_p5, %p701_p4 }
   0xf   :  { %p704_p7 = pnand %p703_p6, %p697_p3 }
  0x11   :  { %707 = shalt.err (!%p704_p7)
}
  0x12   :  { %s782_s24 = smov 64   ;;  %s783_s25 = smov 4  }
  0x13   :  { %34 = dma.hbm_to_vmem [thread:$0]  %s871_s1, 1024, %s29_s13, [#allocation7], %s782_s24, %s782_s24, %s783_s25  }
  0x14   :  { %s708_s30 = scalar_lea.hbm %s870_s0, 1024 }
  0x15   :  { %p709_p8 = scmp.ne.s32.totalorder %s870_s0, %s708_s30  ;;  %p712_p9 = scmp.lt.u32.totalorder %s708_s30, %s870_s0 }
  0x17   :  { %p714_p10 = pnand %p712_p9, %p709_p8 }
  0x19   :  { %717 = shalt.err (!%p714_p10)
}
  0x1a   :  { %s718_s8 = scalar_lea.vmem %s806_s15, 1024  ;;  %p723_p12 = scmp.lt.s32.totalorder %s806_s15, %s806_s15 }
  0x1b   :  { %p719_p11 = scmp.ne.s32.totalorder %s806_s15, %s718_s8  ;;  %p724_p13 = scmp.lt.s32.totalorder %s718_s8, %s718_s8 }
  0x1d   :  { %p725_p0 = por %p724_p13, %p723_p12 }
  0x1f   :  { %p726_p1 = pnand %p725_p0, %p719_p11 }
  0x21   :  { %729 = shalt.err (!%p726_p1)
}
  0x22   :  { %22 = dma.hbm_to_vmem [thread:$0]  %s870_s0, 1024, %s806_s15, [#allocation4], %s782_s24, %s782_s24, %s783_s25  }
  0x23   :  { %s784_s10 = smov [#allocation8]   ;;  %s730_s14 = scalar_lea.hbm %s872_s2, 16 }
  0x24   :  { %s41_s11 = sshll.u32 %s784_s10, 4  ;;  %p731_p2 = scmp.ne.s32.totalorder %s872_s2, %s730_s14  ;;  %s42_s11 = int_to_ptr.vmem [resolvable:$true] %s41_s11 }
  0x25   :  { %p734_p3 = scmp.lt.u32.totalorder %s730_s14, %s872_s2 }
  0x27   :  { %p736_p4 = pnand %p734_p3, %p731_p2 }
  0x29   :  { %739 = shalt.err (!%p736_p4)
}
  0x2a   :  { %s740_s20 = scalar_lea.vmem %s42_s11, 16  ;;  %s744_s0 = scalar_lea.vmem %s42_s11, 32 }
  0x2b   :  { %p741_p5 = scmp.ne.s32.totalorder %s42_s11, %s740_s20  ;;  %p745_p6 = scmp.lt.s32.totalorder %s42_s11, %s42_s11 }
  0x2c   :  { %p746_p7 = scmp.lt.s32.totalorder %s744_s0, %s740_s20 }
  0x2e   :  { %p747_p8 = por %p746_p7, %p745_p6 }
  0x30   :  { %p748_p9 = pnand %p747_p8, %p741_p5 }
  0x32   :  { %751 = shalt.err (!%p748_p9)
}
  0x33   :  { %44 = dma.hbm_to_vmem [thread:$0]  %s872_s2, 16, %s42_s11, [#allocation7]  }
  0x34   :  { %774 = dma.done.wait [#allocation4], 1024  }
  0x35   :  { %775 = vsyncadd [#allocation4], 4294966272 }
  0x36   :  { %776 = dma.done.wait [#allocation7], 1040  }
  0x37   :  { %777 = vsyncadd [#allocation7], 4294966256  ;;  %v670_v0 = vld [vmem:[#allocation6] sm:$0xff]   ;;  %v671_v1 = vld [vmem:[#allocation6 + $0x8] sm:$0xff]   ;;  %s785_s2 = smov [#allocation9]  }
  0x38   :  { %616 = vmatprep.subr.bf16.mxu0 %v670_v0  ;;  %648 = vmatprep.subr.bf16.mxu1 %v670_v0  ;;  %v672_v2 = vld [vmem:[#allocation6 + $0x10] sm:$0xff]   ;;  %v673_v3 = vld [vmem:[#allocation6 + $0x18] sm:$0xff]   ;;  %v678_v4 = vld [vmem:[#allocation3] sm:$0xff]   ;;  %s491_s22 = sshll.u32 %s785_s2, 4  ;;  %s492_s22 = int_to_ptr.vmem [resolvable:$true] %s491_s22 }
  0x39   :  { %617 = vmatpush3.bf16.msra.mxu0 %v670_v0  ;;  %656 = vmatpush3.bf16.msra.mxu1 %v670_v0  ;;  %v679_v5 = vld [vmem:[#allocation3 + $0x20] sm:$0xff]   ;;  %v675_v7 = vld [vmem:[#allocation6 + $0x28] sm:$0xff]   ;;  %v676_v8 = vld [vmem:[#allocation6 + $0x30] sm:$0xff]   ;;  %s752_s23 = scalar_lea.vmem %s492_s22, 1024  ;;  %p757_p11 = scmp.lt.s32.totalorder %s492_s22, %s492_s22 }
  0x3a   :  { %618 = vmatprep.subr.bf16.mxu0 %v671_v1  ;;  %649 = vmatprep.subr.bf16.mxu1 %v671_v1  ;;  %v674_v6 = vld [vmem:[#allocation6 + $0x20] sm:$0xff]   ;;  %v677_v9 = vld [vmem:[#allocation6 + $0x38] sm:$0xff]   ;;  %v680_v10 = vld [vmem:[#allocation3 + $0x8] sm:$0xff]   ;;  %p753_p10 = scmp.ne.s32.totalorder %s492_s22, %s752_s23  ;;  %p758_p12 = scmp.lt.s32.totalorder %s752_s23, %s752_s23 }
  0x3b   :  { %632 = vmatprep.mubr.bf16.mxu0 %v678_v4  ;;  %640 = vmatprep.mubr.bf16.mxu1 %v679_v5  ;;  %v681_v11 = vld [vmem:[#allocation3 + $0x28] sm:$0xff]   ;;  %v682_v12 = vld [vmem:[#allocation3 + $0x10] sm:$0xff]   ;;  %v684_v14 = vld [vmem:[#allocation3 + $0x18] sm:$0xff]  }
  0x3c   :  { %v683_v13 = vld [vmem:[#allocation3 + $0x30] sm:$0xff]   ;;  %v685_v15 = vld [vmem:[#allocation3 + $0x38] sm:$0xff]   ;;  %v520_v16 = vld [vmem:[#allocation8] ss:$0 sm:$0xff]  ;;  %p759_p13 = por %p758_p12, %p757_p11 }
  0x3d   :  { %619 = vmatpush3.bf16.msra.mxu0 %v671_v1  ;;  %657 = vmatpush3.bf16.msra.mxu1 %v671_v1 }
  0x3e   :  { %620 = vmatprep.subr.bf16.mxu0 %v672_v2  ;;  %650 = vmatprep.subr.bf16.mxu1 %v672_v2  ;;  %p760_p0 = pnand %p759_p13, %p753_p10 }
  0x41   :  { %621 = vmatpush3.bf16.msra.mxu0 %v672_v2  ;;  %658 = vmatpush3.bf16.msra.mxu1 %v672_v2 }
  0x42   :  { %622 = vmatprep.subr.bf16.mxu0 %v673_v3  ;;  %651 = vmatprep.subr.bf16.mxu1 %v673_v3 }
  0x45   :  { %623 = vmatpush3.bf16.msra.mxu0 %v673_v3  ;;  %659 = vmatpush3.bf16.msra.mxu1 %v673_v3 }
  0x46   :  { %624 = vmatprep.subr.bf16.mxu0 %v674_v6  ;;  %652 = vmatprep.subr.bf16.mxu1 %v674_v6 }
  0x49   :  { %625 = vmatpush3.bf16.msra.mxu0 %v674_v6  ;;  %660 = vmatpush3.bf16.msra.mxu1 %v674_v6 }
  0x4a   :  { %626 = vmatprep.subr.bf16.mxu0 %v675_v7  ;;  %653 = vmatprep.subr.bf16.mxu1 %v675_v7 }
  0x4d   :  { %627 = vmatpush3.bf16.msra.mxu0 %v675_v7  ;;  %661 = vmatpush3.bf16.msra.mxu1 %v675_v7 }
  0x4e   :  { %628 = vmatprep.subr.bf16.mxu0 %v676_v8  ;;  %654 = vmatprep.subr.bf16.mxu1 %v676_v8 }
  0x51   :  { %629 = vmatpush3.bf16.msra.mxu0 %v676_v8  ;;  %662 = vmatpush3.bf16.msra.mxu1 %v676_v8 }
  0x52   :  { %630 = vmatprep.subr.bf16.mxu0 %v677_v9  ;;  %655 = vmatprep.subr.bf16.mxu1 %v677_v9 }
  0x55   :  { %631 = vmatpush3.bf16.msra.mxu0 %v677_v9  ;;  %663 = vmatpush3.bf16.msra.mxu1 %v677_v9 }
  0x58   :  { %633 = vmatmul.mubr.bf16.vlgmr.msra.gmra.mrb[0].mxu0 %v680_v10  ;;  %641 = vmatmul.mubr.bf16.vlgmr.msra.gmra.mrb[0].mxu1 %v681_v11 }
  0x59   :  { %636 = vmatprep.mubr.bf16.mxu0 %v682_v12  ;;  %644 = vmatprep.mubr.bf16.mxu1 %v683_v13 }
  0x60   :  { %637 = vmatmul.mubr.bf16.gmra.mrb[4].mxu0 %v684_v14  ;;  %645 = vmatmul.mubr.bf16.gmra.mrb[4].mxu1 %v685_v15 }
 0x12b   :  { %v634_v17 = vpop.f32.mrb[0].mxu0  ;;  %v642_v18 = vpop.f32.mrb[0].mxu1 }
 0x12c   :  { %v376_v19 = vadd.f32 %v634_v17, %v520_v16  ;;  %v384_v20 = vadd.f32 %v642_v18, %v520_v16  ;;  %v253_v21 = vpop.f32.mrb[1].mxu0  ;;  %v285_v22 = vpop.f32.mrb[1].mxu1 }
 0x12d   :  { %v374_v23 = vadd.f32 %v520_v16, %v253_v21  ;;  %v382_v24 = vadd.f32 %v520_v16, %v285_v22  ;;  %v635_v25 = vpop.f32.mrb[2].mxu0  ;;  %v643_v26 = vpop.f32.mrb[2].mxu1 }
 0x12e   :  { %v377_v27 = vadd.f32 %v635_v25, %v520_v16  ;;  %v385_v28 = vadd.f32 %v643_v26, %v520_v16  ;;  %v256_v29 = vpop.f32.mrb[3].mxu0  ;;  %v288_v30 = vpop.f32.mrb[3].mxu1  ;;  %v392_v33 = vmax.f32 %v376_v19, 0.0  ;;  %v400_v34 = vmax.f32 %v384_v20, 0.0 }
 0x12f   :  { %v375_v31 = vadd.f32 %v520_v16, %v256_v29  ;;  %v383_v32 = vadd.f32 %v520_v16, %v288_v30  ;;  %v390_v37 = vmax.f32 %v374_v23, 0.0  ;;  %v398_v38 = vmax.f32 %v382_v24, 0.0 }
 0x130   :  { %v393_v35 = vmax.f32 %v377_v27, 0.0  ;;  %v401_v36 = vmax.f32 %v385_v28, 0.0 }
 0x131   :  { %v391_v39 = vmax.f32 %v375_v31, 0.0  ;;  %v399_v40 = vmax.f32 %v383_v32, 0.0 }
 0x132   :  { %v561_v41 = vpack.c.bf16 %v393_v35, %v392_v33  ;;  %v581_v42 = vpack.c.bf16 %v401_v36, %v400_v34 }
 0x133   :  { %v556_v43 = vpack.c.bf16 %v391_v39, %v390_v37  ;;  %v576_v44 = vpack.c.bf16 %v399_v40, %v398_v38  ;;  %v638_v45 = vpop.f32.mrb[4].mxu0  ;;  %v646_v46 = vpop.f32.mrb[4].mxu1 }
 0x134   :  { %593 = vst [vmem:[#allocation9 + $0x8] sm:$0xff] %v561_v41   ;;  %597 = vst [vmem:[#allocation9 + $0x28] sm:$0xff] %v581_v42   ;;  %v380_v47 = vadd.f32 %v638_v45, %v520_v16  ;;  %v388_v48 = vadd.f32 %v646_v46, %v520_v16  ;;  %v269_v49 = vpop.f32.mrb[5].mxu0  ;;  %v301_v50 = vpop.f32.mrb[5].mxu1 }
 0x135   :  { %557 = vst [vmem:[#allocation9] sm:$0xff] %v556_v43   ;;  %596 = vst [vmem:[#allocation9 + $0x20] sm:$0xff] %v576_v44   ;;  %v378_v51 = vadd.f32 %v520_v16, %v269_v49  ;;  %v386_v52 = vadd.f32 %v520_v16, %v301_v50  ;;  %v639_v53 = vpop.f32.mrb[6].mxu0  ;;  %v647_v54 = vpop.f32.mrb[6].mxu1 }
 0x136   :  { %v381_v55 = vadd.f32 %v639_v53, %v520_v16  ;;  %v389_v56 = vadd.f32 %v647_v54, %v520_v16  ;;  %v272_v57 = vpop.f32.mrb[7].mxu0  ;;  %v304_v58 = vpop.f32.mrb[7].mxu1  ;;  %v396_v61 = vmax.f32 %v380_v47, 0.0  ;;  %v404_v62 = vmax.f32 %v388_v48, 0.0 }
 0x137   :  { %v379_v59 = vadd.f32 %v520_v16, %v272_v57  ;;  %v387_v60 = vadd.f32 %v520_v16, %v304_v58  ;;  %v394_v1 = vmax.f32 %v378_v51, 0.0  ;;  %v402_v2 = vmax.f32 %v386_v52, 0.0 }
 0x138   :  { %v397_v63 = vmax.f32 %v381_v55, 0.0  ;;  %v405_v0 = vmax.f32 %v389_v56, 0.0 }
 0x139   :  { %v395_v3 = vmax.f32 %v379_v59, 0.0  ;;  %v403_v4 = vmax.f32 %v387_v60, 0.0 }
 0x13a   :  { %v571_v5 = vpack.c.bf16 %v397_v63, %v396_v61  ;;  %v591_v6 = vpack.c.bf16 %v405_v0, %v404_v62 }
 0x13b   :  { %v566_v7 = vpack.c.bf16 %v395_v3, %v394_v1  ;;  %v586_v8 = vpack.c.bf16 %v403_v4, %v402_v2 }
 0x13c   :  { %595 = vst [vmem:[#allocation9 + $0x18] sm:$0xff] %v571_v5   ;;  %599 = vst [vmem:[#allocation9 + $0x38] sm:$0xff] %v591_v6  }
 0x13d   :  { %594 = vst [vmem:[#allocation9 + $0x10] sm:$0xff] %v566_v7   ;;  %598 = vst [vmem:[#allocation9 + $0x30] sm:$0xff] %v586_v8  }
 0x13e   :  { %763 = shalt.err (!%p760_p0)
}
 0x13f   :  { %s764_s28 = scalar_lea.hbm %s873_s3, 1024 }
 0x140   :  { %p765_p1 = scmp.ne.s32.totalorder %s873_s3, %s764_s28  ;;  %p768_p2 = scmp.lt.u32.totalorder %s764_s28, %s873_s3 }
 0x142   :  { %p770_p3 = pnand %p768_p2, %p765_p1 }
 0x144   :  { %773 = shalt.err (!%p770_p3)
}
 0x145   :  { %497 = dma.vmem_to_hbm [thread:$0]  %s492_s22, 1024, %s873_s3, [#allocation5], %s782_s24, %s782_s24, %s783_s25  }
 0x146   :  { %778 = dma.done.wait [#allocation5], 1024  }
 0x147   :  { %779 = vsyncadd [#allocation5], 4294966272 }
 0x148   :  { %501 = vsyncpa [#allocation4], 1 }
 0x149   :  { %502 = vsyncpa [#allocation7], 1 }
 0x14a   :  { %503 = vsyncpa [#allocation5], 1 }

</bundles_post_ra>
